<compile_context>
chip_gen: v5e
topology: v5e:2x2
jax: 0.10.0
libtpu: 0.0.40
codegen_flags: <defaults>
</compile_context>

<pallas_src>
import jax
import jax.numpy as jnp
from jax.experimental import pallas as pl
from jax.experimental.pallas import tpu as pltpu


def _nlgate_kernel(q_ref, k_ref, v_ref, o_ref):
    # Blocks: q (bb, tm, c), k (bb, c, tf), v (bb, tf, c), o (bb, tm, c).
    q = q_ref[...]          # native dtype straight to the MXU
    k = k_ref[...]
    v = v_ref[...]

    # Scores: (bb, tm, tf), f32 accumulation on the MXU.
    s = jnp.einsum("btc,bcf->btf", q, k, preferred_element_type=jnp.float32)

    # Numerically-stable softmax with deferred normalization.
    m = jnp.max(s, axis=-1, keepdims=True)                 # (bb, tm, 1)
    p = jnp.exp(s - m)                                     # (bb, tm, tf) f32
    denom = jnp.sum(p, axis=-1, keepdims=True)             # (bb, tm, 1)  f32

    # Second matmul in native dtype, f32 accumulate; scale afterwards so the
    # divide happens on the (tm, c) result, not the (tm, tf) score matrix.
    f = jnp.einsum("btf,bfc->btc", p.astype(v.dtype), v,
                   preferred_element_type=jnp.float32)     # (bb, tm, c) f32
    f = f * pl.reciprocal(denom, approx=True)

    # Residual add in f32; single cast on store.
    o_ref[...] = (q.astype(jnp.float32) + f).astype(o_ref.dtype)


def _pick_thw_tile(thw, cap, align=8):
    """Largest divisor of thw that is <= cap and align-divisible (or thw itself)."""
    if thw <= cap:
        return thw
    for d in range(cap, 0, -1):
        if thw % d == 0 and d % align == 0:
            return d
    return thw  # fall back to a single full-size block (always layout-legal)


def nlgate_pallas(x0, x1, *, thw_dim, c_dim, tf_dim,
                  tm_target=256, vmem_budget_bytes=12 * 1024 * 1024):
    """x0: first modality (k and v source), x1: second modality (q source)."""
    # Glue: PyTorch .view() == row-major reshape.
    qin = x1.reshape(-1, thw_dim, c_dim)        # (B, thw, c)
    kin = x0.reshape(-1, c_dim, tf_dim)         # (B, c, tf)
    vin = x0.reshape(-1, tf_dim, c_dim)         # (B, tf, c)
    B = qin.shape[0]
    itemsize = jnp.dtype(qin.dtype).itemsize

    # thw tile: native MXU M tile (256 on v6e/v7x, fine on v5e), 8-aligned.
    tm = _pick_thw_tile(thw_dim, tm_target)

    # Batch-block size: as many batch elements per step as fit a conservative
    # VMEM budget (amortizes the ~0.35 us per-grid-step overhead at small
    # shapes; keeps per-step footprint bounded for big ones).
    def _step_bytes(bb):
        blocks = bb * (2 * tm * c_dim + 2 * c_dim * tf_dim) * itemsize  # q,o,k,v
        scores = bb * tm * tf_dim * 4                                   # s/p f32
        return 2 * blocks + 2 * scores          # double-buffering + temp slack

    bb = 1
    for d in range(B, 0, -1):
        if B % d == 0 and _step_bytes(d) <= vmem_budget_bytes:
            bb = d
            break

    grid = (B // bb, thw_dim // tm)             # thw is the fast (inner) axis

    # Advisory cost hint for the XLA scheduler around the custom call.
    flops = 2 * B * thw_dim * tf_dim * c_dim * 2          # two matmuls
    cost = pl.CostEstimate(
        flops=flops,
        transcendentals=B * thw_dim * tf_dim,             # exp
        bytes_accessed=(qin.size + kin.size + vin.size + qin.size) * itemsize,
    )

    out = pl.pallas_call(
        _nlgate_kernel,
        out_shape=jax.ShapeDtypeStruct((B, thw_dim, c_dim), qin.dtype),
        grid_spec=pltpu.PrefetchScalarGridSpec(
            num_scalar_prefetch=0,
            grid=grid,
            in_specs=[
                # q: new tile every (batch-block, thw-tile)
                pl.BlockSpec((bb, tm, c_dim), lambda b, t: (b, t, 0)),
                # k, v: constant along the thw axis -> VMEM-resident per batch block
                pl.BlockSpec((bb, c_dim, tf_dim), lambda b, t: (b, 0, 0)),
                pl.BlockSpec((bb, tf_dim, c_dim), lambda b, t: (b, 0, 0)),
            ],
            out_specs=pl.BlockSpec((bb, tm, c_dim), lambda b, t: (b, t, 0)),
        ),
        compiler_params=pltpu.CompilerParams(
            dimension_semantics=("parallel", "parallel"),
            vmem_limit_bytes=48 * 1024 * 1024,
        ),
        cost_estimate=cost,
    )(qin, kin, vin)

    # Glue: torch.flatten(qin + finalout, 1)
    return out.reshape(B, thw_dim * c_dim)


def nlgate_reference(x0, x1, *, thw_dim, c_dim, tf_dim):
    qin = x1.reshape(-1, thw_dim, c_dim).astype(jnp.float32)
    kin = x0.reshape(-1, c_dim, tf_dim).astype(jnp.float32)
    vin = x0.reshape(-1, tf_dim, c_dim).astype(jnp.float32)
    s = jnp.einsum("btc,bcf->btf", qin, kin)
    p = jax.nn.softmax(s, axis=2)
    f = jnp.einsum("btf,bfc->btc", p, vin)
    return (qin + f).reshape(qin.shape[0], -1)


if __name__ == "__main__":
    B, THW, C, TF = 2, 8, 32, 16

    key = jax.random.PRNGKey(0)
    k0, k1 = jax.random.split(key)
    # x[0]: k/v source modality, x[1]: q source modality (shapes chosen so the
    # PyTorch .view() calls are valid: numel(x0)/B == c*tf, numel(x1)/B == thw*c).
    x0 = jax.random.normal(k0, (B, C, TF), dtype=jnp.float32)
    x1 = jax.random.normal(k1, (B, THW, C), dtype=jnp.float32)

    out = nlgate_pallas(x0, x1, thw_dim=THW, c_dim=C, tf_dim=TF)
    out = jax.block_until_ready(out)

    ref = nlgate_reference(x0, x1, thw_dim=THW, c_dim=C, tf_dim=TF)
    assert out.shape == (B, THW * C), out.shape
    # Tolerance accounts for the EUP approximate reciprocal in the deferred
    # softmax normalization (and bf16 inputs, if used).
    assert jnp.allclose(out, ref, atol=1e-2, rtol=1e-2), "mismatch vs reference"

    print("KERNEL_OK")
</pallas_src>

<mosaic_0001>
module attributes {stable_mosaic.version = 11 : i64} {
  func.func @_nlgate_kernel(%arg0: i32, %arg1: i32, %arg2: memref<2x8x32xf32, #tpu.memory_space<vmem>>, %arg3: memref<2x32x16xf32, #tpu.memory_space<vmem>>, %arg4: memref<2x16x32xf32, #tpu.memory_space<vmem>>, %arg5: memref<2x8x32xf32, #tpu.memory_space<vmem>>) attributes {dimension_semantics = [#tpu.dimension_semantics<parallel>, #tpu.dimension_semantics<parallel>], iteration_bounds = array<i64: 1, 1>, scalar_prefetch = 0 : i64, scratch_operands = 0 : i64, tpu.core_type = #tpu.core_type<tc>, window_params = [{transform_indices = @transform_0, window_bounds = array<i64: 2, 8, 32>}, {transform_indices = @transform_1, window_bounds = array<i64: 2, 32, 16>}, {transform_indices = @transform_2, window_bounds = array<i64: 2, 16, 32>}, {transform_indices = @transform_3, window_bounds = array<i64: 2, 8, 32>}]} {
    %c0 = arith.constant 0 : index
    %c0_0 = arith.constant 0 : index
    %c0_1 = arith.constant 0 : index
    %0 = vector.load %arg2[%c0, %c0_0, %c0_1] : memref<2x8x32xf32, #tpu.memory_space<vmem>>, vector<2x8x32xf32>
    %c0_2 = arith.constant 0 : index
    %c0_3 = arith.constant 0 : index
    %c0_4 = arith.constant 0 : index
    %1 = vector.load %arg3[%c0_2, %c0_3, %c0_4] : memref<2x32x16xf32, #tpu.memory_space<vmem>>, vector<2x32x16xf32>
    %c0_5 = arith.constant 0 : index
    %c0_6 = arith.constant 0 : index
    %c0_7 = arith.constant 0 : index
    %2 = vector.load %arg4[%c0_5, %c0_6, %c0_7] : memref<2x16x32xf32, #tpu.memory_space<vmem>>, vector<2x16x32xf32>
    "tpu.trace_start"() <{level = 10 : i32, message = "btc,bcf->btf"}> : () -> ()
    %cst = arith.constant dense<0.000000e+00> : vector<2x8x16xf32>
    %3 = tpu.matmul %0, %1, %cst {dimension_numbers = #tpu.dot_dimension_numbers<[2], [1], [1], [2], [0, 0, 0, 1, 1, 2], [0], [0]>} : vector<2x8x32xf32>, vector<2x32x16xf32>, vector<2x8x16xf32> -> vector<2x8x16xf32>
    "tpu.trace_stop"() : () -> ()
    %cst_8 = arith.constant dense<0xFF800000> : vector<2x8xf32>
    %4 = vector.multi_reduction <maximumf>, %3, %cst_8 [2] : vector<2x8x16xf32> to vector<2x8xf32>
    %5 = vector.shape_cast %4 : vector<2x8xf32> to vector<2x8x1xf32>
    %6 = vector.broadcast %5 : vector<2x8x1xf32> to vector<2x8x16xf32>
    %7 = arith.subf %3, %6 : vector<2x8x16xf32>
    %8 = math.exp %7 : vector<2x8x16xf32>
    %cst_9 = arith.constant dense<0.000000e+00> : vector<2x8xf32>
    %9 = vector.multi_reduction <add>, %8, %cst_9 [2] : vector<2x8x16xf32> to vector<2x8xf32>
    %10 = vector.shape_cast %9 : vector<2x8xf32> to vector<2x8x1xf32>
    "tpu.trace_start"() <{level = 10 : i32, message = "btf,bfc->btc"}> : () -> ()
    %cst_10 = arith.constant dense<0.000000e+00> : vector<2x8x32xf32>
    %11 = tpu.matmul %8, %2, %cst_10 {dimension_numbers = #tpu.dot_dimension_numbers<[2], [1], [1], [2], [0, 0, 0, 1, 1, 2], [0], [0]>} : vector<2x8x16xf32>, vector<2x16x32xf32>, vector<2x8x32xf32> -> vector<2x8x32xf32>
    "tpu.trace_stop"() : () -> ()
    %12 = tpu.reciprocal %10 {approx = true} : vector<2x8x1xf32> -> vector<2x8x1xf32>
    %13 = vector.broadcast %12 : vector<2x8x1xf32> to vector<2x8x32xf32>
    %14 = arith.mulf %11, %13 : vector<2x8x32xf32>
    %15 = arith.addf %0, %14 : vector<2x8x32xf32>
    %c0_11 = arith.constant 0 : index
    %c0_12 = arith.constant 0 : index
    %c0_13 = arith.constant 0 : index
    %16 = vector.load %arg5[%c0_11, %c0_12, %c0_13] : memref<2x8x32xf32, #tpu.memory_space<vmem>>, vector<2x8x32xf32>
    tpu.vector_store %arg5[%c0_11, %c0_12, %c0_13], %15 {strides = array<i32>} : memref<2x8x32xf32, #tpu.memory_space<vmem>>, vector<2x8x32xf32>,
    return
  }
  func.func @transform_0(%arg0: i32, %arg1: i32) -> (i32, i32, i32) {
    %c0_i32 = arith.constant 0 : i32
    %c0_i32_0 = arith.constant 0 : i32
    return %arg0, %arg1, %c0_i32 : i32, i32, i32
  }
  func.func @transform_1(%arg0: i32, %arg1: i32) -> (i32, i32, i32) {
    %c0_i32 = arith.constant 0 : i32
    %c0_i32_0 = arith.constant 0 : i32
    %c0_i32_1 = arith.constant 0 : i32
    return %arg0, %c0_i32, %c0_i32_0 : i32, i32, i32
  }
  func.func @transform_2(%arg0: i32, %arg1: i32) -> (i32, i32, i32) {
    %c0_i32 = arith.constant 0 : i32
    %c0_i32_0 = arith.constant 0 : i32
    %c0_i32_1 = arith.constant 0 : i32
    return %arg0, %c0_i32, %c0_i32_0 : i32, i32, i32
  }
  func.func @transform_3(%arg0: i32, %arg1: i32) -> (i32, i32, i32) {
    %c0_i32 = arith.constant 0 : i32
    %c0_i32_0 = arith.constant 0 : i32
    return %arg0, %arg1, %c0_i32 : i32, i32, i32
  }
}

</mosaic_0001>

<bundles_post_ra>
// kernel: tpu_custom_call.1
= control target key start
LH: loop header
LB: loop body
LE: loop exit
PB: predicated region body
PF: predicated region fallthrough
CT: control target
= control target key end

     0   :  { %s286_s0 = inlined_call_operand.vmem [shape: f32[2,8,32], index: 0, kind: input, shape index: {}]   ;;  %s287_s1 = inlined_call_operand.vmem [shape: f32[2,32,16], index: 1, kind: input, shape index: {}]   ;;  %s288_s2 = inlined_call_operand.vmem [shape: f32[2,16,32], index: 2, kind: input, shape index: {}]   ;;  %s289_s3 = inlined_call_operand.hbm [shape: f32[2,8,32], index: 3, kind: output, shape index: {}]  }
   0x1   :  { %v20_v0 = vld [vmem:[%s287_s1 + $0x18] sm:$0xff]  ;;  %v19_v1 = vld [vmem:[%s287_s1 + $0x10] sm:$0xff]  ;;  %v18_v3 = vld [vmem:[%s287_s1 + $0x8] sm:$0xff] }
   0x2   :  { %45 = vmatpush.msra.mxu0 %v20_v0  ;;  %v24_v2 = vld [vmem:[%s287_s1 + $0x38] sm:$0xff]  ;;  %v23_v4 = vld [vmem:[%s287_s1 + $0x30] sm:$0xff]  ;;  %v22_v5 = vld [vmem:[%s287_s1 + $0x28] sm:$0xff] }
   0x3   :  { %68 = vmatpush.msra.mxu1 %v24_v2 }
   0x4   :  { %46 = vmatpush.msra.mxu0 %v19_v1 }
   0x5   :  { %8 = vsyncpa [#allocation3], 0  ;;  %v17_v6 = vld [vmem:[%s287_s1] sm:$0xff]  ;;  %69 = vmatpush.msra.mxu1 %v23_v4  ;;  %vm29_vm0 = vcmask 261120   ;;  %v16_v9 = vld [vmem:[%s286_s0 + $0x8] sm:$0xff]  ;;  %vm76_vm1 = vcmask 130048  }
   0x6   :  { %47 = vmatpush.msra.mxu0 %v18_v3  ;;  %v15_v7 = vld [vmem:[%s286_s0] sm:$0xff]  ;;  %v26_v14 = vld [vmem:[%s288_s2 + $0x8] sm:$0xff]  ;;  %v28_v16 = vld [vmem:[%s288_s2 + $0x18] sm:$0xff]  ;;  %s155_s14 = sshll.u32 %s289_s3, 4  ;;  %s209_s15 = smov 128   ;;  %s156_s14 = int_to_ptr.hbm [resolvable:$true] %s155_s14 }
   0x7   :  { %v21_v8 = vld [vmem:[%s287_s1 + $0x20] sm:$0xff]  ;;  %70 = vmatpush.msra.mxu1 %v22_v5  ;;  %112 = vmatpush.msra.mxu2 %v26_v14  ;;  %v27_v17 = vld [vmem:[%s288_s2 + $0x10] sm:$0xff]  ;;  %s210_s16 = smov 8  }
   0x8   :  { %48 = vmatpush.msra.mxu0 %v17_v6  ;;  %v25_v15 = vld [vmem:[%s288_s2] sm:$0xff]  ;;  %135 = vmatpush.msra.mxu3 %v28_v16  ;;  %s208_s2 = smov [#allocation2]  }
   0x9   :  { %167 = vmatmul.msk.f32.vlgmr.msra.gmra.mxu0 %vm29_vm0, %v15_v7  ;;  %71 = vmatpush.msra.mxu1 %v21_v8  ;;  %s153_s11 = sshll.u32 %s208_s2, 4  ;;  %s154_s11 = int_to_ptr.vmem [resolvable:$true] %s153_s11 }
   0xa   :  { %168 = vmatmul.msk.f32.vlgmr.msra.gmra.mxu1 %vm29_vm0, %v16_v9  ;;  %113 = vmatpush.msra.mxu2 %v25_v15 }
   0xb   :  { %136 = vmatpush.msra.mxu3 %v27_v17 }
  0x86   :  { %v50_v10 = vpop.f32.mrf.mxu0 }
  0x87   :  { %v77_v11 = vsel %vm76_vm1, %v50_v10, -inf  ;;  %v73_v12 = vpop.f32.mrf.mxu1 }
  0x88   :  { %78 = vmax.xlane.f32.xlu0 %v77_v11  ;;  %v80_v13 = vsel %vm76_vm1, %v73_v12, -inf }
  0x90   :  { %81 = vmax.xlane.f32.xlu0 %v80_v13 }
  0xfb   :  { %v79_v18 = vpop.xlane.xlu0 %78 }
  0xfc   :  { %v83_v19 = vsub.f32 %v50_v10, %v79_v18 }
  0xfe   :  { %v85_v20 = vmul.f32 1.442695, %v83_v19 }
 0x100   :  { %174 = vpow2.f32 %v85_v20 }
 0x103   :  { %v82_v21 = vpop.xlane.xlu0 %81 }
 0x104   :  { %v84_v22 = vsub.f32 %v73_v12, %v82_v21 }
 0x106   :  { %v175_v23 = vpop.eup %174  ;;  %v87_v24 = vmul.f32 1.442695, %v84_v22 }
 0x107   :  { %169 = vmatmul.msk.f32.vlgmr.msra.gmra.mxu2 %vm76_vm1, %v175_v23  ;;  %v89_v25 = vsel %vm76_vm1, %v175_v23, 0.0 }
 0x108   :  { %176 = vpow2.f32 %v87_v24  ;;  %90 = vadd.xlane.f32.xlu1 %v89_v25 }
 0x10e   :  { %v177_v26 = vpop.eup %176 }
 0x10f   :  { %170 = vmatmul.msk.f32.vlgmr.msra.gmra.mxu3 %vm76_vm1, %v177_v26  ;;  %v92_v27 = vsel %vm76_vm1, %v177_v26, 0.0 }
 0x110   :  { %93 = vadd.xlane.f32.xlu1 %v92_v27 }
 0x17b   :  { %v91_v28 = vpop.xlane.xlu1 %90 }
 0x17c   :  { %178 = vrcp.f32 %v91_v28 }
 0x182   :  { %v179_v30 = vpop.eup %178 }
 0x183   :  { %v94_v29 = vpop.xlane.xlu1 %93 }
 0x184   :  { %180 = vrcp.f32 %v94_v29 }
 0x18a   :  { %v115_v31 = vpop.f32.mrf.mxu2  ;;  %v181_v34 = vpop.eup %180 }
 0x18b   :  { %v143_v32 = vmul.f32 %v179_v30, %v115_v31 }
 0x18d   :  { %v145_v33 = vadd.f32 %v143_v32, %v15_v7 }
 0x18f   :  { %147 = vst.msk [vmem:[#allocation2] sm:$0xff] %vm29_vm0, %v145_v33 }
 0x192   :  { %v138_v35 = vpop.f32.mrf.mxu3 }
 0x193   :  { %v144_v36 = vmul.f32 %v181_v34, %v138_v35 }
 0x195   :  { %v146_v37 = vadd.f32 %v144_v36, %v16_v9 }
 0x197   :  { %148 = vst.msk [vmem:[#allocation2 + $0x8] sm:$0xff] %vm29_vm0, %v146_v37 }
 0x198   :  { %161 = dma.vmem_to_hbm [thread:$0]  %s154_s11, 256, %s156_s14, [#allocation3], %s209_s15, %s209_s15, %s210_s16  }
 0x199   :  { %206 = dma.done.wait [#allocation3], 256  }
 0x19a   :  { %207 = vsyncadd [#allocation3], 4294967040 }
 0x19b   :  { %166 = vsyncpa [#allocation3], 1 }

</bundles_post_ra>
